<compile_context>
chip_gen: v7x
topology: tpu7x:2x2x1
jax: 0.10.0
libtpu: 0.0.40
codegen_flags: <defaults>
</compile_context>

<pallas_src>
import jax
import jax.numpy as jnp
from jax.experimental import pallas as pl
from jax.experimental.pallas import tpu as pltpu


def _sigmoid(x):
    # tanh-based sigmoid: single EUP transcendental, avoids the f32 divide.
    return 0.5 * (jnp.tanh(0.5 * x) + 1.0)


def mlp_kernel(x_ref, w1_ref, b1_ref, w2_ref, b2_ref, w3_ref, b3_ref, o_ref):
    x = x_ref[...]                                                   # (tb, D_in)
    h1 = _sigmoid(jnp.dot(x, w1_ref[...],
                          preferred_element_type=jnp.float32) + b1_ref[...])
    h2 = _sigmoid(jnp.dot(h1, w2_ref[...],
                          preferred_element_type=jnp.float32) + b2_ref[...])
    h3 = jnp.dot(h2, w3_ref[...],
                 preferred_element_type=jnp.float32) + b3_ref[...]   # (tb, 128)
    o_ref[...] = _sigmoid(h3)                                        # lane-dense store


def _round_up(n, m):
    return (n + m - 1) // m * m


def mlp_forward(x, w1, b1, w2, b2, w3, b3, *, tile_b=256):
    """x: (B, D_in) f32. Weights (in,out); biases (1,out). Returns (B, 1)."""
    B, D_in = x.shape
    H = w1.shape[1]              # 256
    N_out = w3.shape[1]          # 1
    N_PAD = 128                  # lane-dense output width

    # Pad the last layer to 128 lanes (zero columns / zero bias beyond col 0).
    w3p = jnp.zeros((H, N_PAD), w3.dtype).at[:, :N_out].set(w3)
    b3p = jnp.zeros((1, N_PAD), b3.dtype).at[:, :N_out].set(b3)

    # Batch tile: multiple of 8 sublanes; cap at tile_b for large batches.
    tb = min(tile_b, _round_up(B, 8))
    Bp = _round_up(B, tb)
    if Bp != B:
        x = jnp.pad(x, ((0, Bp - B), (0, 0)))

    grid = (Bp // tb,)
    out = pl.pallas_call(
        mlp_kernel,
        out_shape=jax.ShapeDtypeStruct((Bp, N_PAD), jnp.float32),
        grid_spec=pltpu.PrefetchScalarGridSpec(
            num_scalar_prefetch=0,
            grid=grid,
            in_specs=[
                pl.BlockSpec((tb, D_in), lambda i: (i, 0)),    # x: streamed over batch
                pl.BlockSpec((D_in, H), lambda i: (0, 0)),     # weights: grid-invariant,
                pl.BlockSpec((1, H),    lambda i: (0, 0)),     # stay resident in VMEM
                pl.BlockSpec((H, H),    lambda i: (0, 0)),
                pl.BlockSpec((1, H),    lambda i: (0, 0)),
                pl.BlockSpec((H, N_PAD), lambda i: (0, 0)),
                pl.BlockSpec((1, N_PAD), lambda i: (0, 0)),
            ],
            out_specs=pl.BlockSpec((tb, N_PAD), lambda i: (i, 0)),
        ),
        compiler_params=pltpu.CompilerParams(
            dimension_semantics=("parallel",)),   # v7x: 2 TCs split the batch axis
    )(x, w1, b1, w2, b2, w3p, b3p)

    # TODO(synk): for very large B on v6e/v7x, feed bf16 weights/activations
    # into jnp.dot (keep f32 accumulate) for the higher MXU throughput.
    return out[:B, :N_out]


def init_linear_params(key, fan_in, fan_out):
    # Mimics PyTorch's default U(-1/sqrt(fan_in), 1/sqrt(fan_in)).
    kw, kb = jax.random.split(key)
    bound = 1.0 / jnp.sqrt(jnp.float32(fan_in))
    w = jax.random.uniform(kw, (fan_in, fan_out), jnp.float32, -bound, bound)
    b = jax.random.uniform(kb, (1, fan_out), jnp.float32, -bound, bound)
    return w, b


if __name__ == "__main__":
    key = jax.random.PRNGKey(0)
    k_x, k1, k2, k3 = jax.random.split(key, 4)

    B = 8          # batch
    D_IN = 32      # input_size

    x = jax.random.normal(k_x, (B, D_IN), jnp.float32)
    w1, b1 = init_linear_params(k1, D_IN, 256)
    w2, b2 = init_linear_params(k2, 256, 256)
    w3, b3 = init_linear_params(k3, 256, 1)

    out = mlp_forward(x, w1, b1, w2, b2, w3, b3)
    out = jax.block_until_ready(out)

    # Plain-JAX reference.
    ref = jax.nn.sigmoid(x @ w1 + b1)
    ref = jax.nn.sigmoid(ref @ w2 + b2)
    ref = jax.nn.sigmoid(ref @ w3 + b3)
    assert out.shape == (B, 1)
    assert jnp.allclose(out, ref, atol=1e-5, rtol=1e-5)

    print("KERNEL_OK")
</pallas_src>

<mosaic_0001>
module attributes {stable_mosaic.version = 11 : i64} {
  func.func @mlp_kernel(%arg0: i32, %arg1: memref<8x32xf32, #tpu.memory_space<vmem>>, %arg2: memref<32x256xf32, #tpu.memory_space<vmem>>, %arg3: memref<1x256xf32, #tpu.memory_space<vmem>>, %arg4: memref<256x256xf32, #tpu.memory_space<vmem>>, %arg5: memref<1x256xf32, #tpu.memory_space<vmem>>, %arg6: memref<256x128xf32, #tpu.memory_space<vmem>>, %arg7: memref<1x128xf32, #tpu.memory_space<vmem>>, %arg8: memref<8x128xf32, #tpu.memory_space<vmem>>) attributes {dimension_semantics = [#tpu.dimension_semantics<parallel>], iteration_bounds = array<i64: 1>, scalar_prefetch = 0 : i64, scratch_operands = 0 : i64, tpu.core_type = #tpu.core_type<tc>, window_params = [{transform_indices = @transform_0, window_bounds = array<i64: 8, 32>}, {pipeline_mode = #tpu.pipeline_mode<synchronous>, transform_indices = @transform_1, window_bounds = array<i64: 32, 256>}, {pipeline_mode = #tpu.pipeline_mode<synchronous>, transform_indices = @transform_2, window_bounds = array<i64: 1, 256>}, {pipeline_mode = #tpu.pipeline_mode<synchronous>, transform_indices = @transform_3, window_bounds = array<i64: 256, 256>}, {pipeline_mode = #tpu.pipeline_mode<synchronous>, transform_indices = @transform_4, window_bounds = array<i64: 1, 256>}, {pipeline_mode = #tpu.pipeline_mode<synchronous>, transform_indices = @transform_5, window_bounds = array<i64: 256, 128>}, {pipeline_mode = #tpu.pipeline_mode<synchronous>, transform_indices = @transform_6, window_bounds = array<i64: 1, 128>}, {transform_indices = @transform_7, window_bounds = array<i64: 8, 128>}]} {
    %c0 = arith.constant 0 : index
    %c0_0 = arith.constant 0 : index
    %0 = vector.load %arg1[%c0, %c0_0] : memref<8x32xf32, #tpu.memory_space<vmem>>, vector<8x32xf32>
    %c0_1 = arith.constant 0 : index
    %c0_2 = arith.constant 0 : index
    %1 = vector.load %arg2[%c0_1, %c0_2] : memref<32x256xf32, #tpu.memory_space<vmem>>, vector<32x256xf32>
    %cst = arith.constant dense<0.000000e+00> : vector<8x256xf32>
    %2 = tpu.matmul %0, %1, %cst {dimension_numbers = #tpu.dot_dimension_numbers<[1], [0], [0], [1], [0, 0, 1, 1], [], []>} : vector<8x32xf32>, vector<32x256xf32>, vector<8x256xf32> -> vector<8x256xf32>
    %c0_3 = arith.constant 0 : index
    %c0_4 = arith.constant 0 : index
    %3 = vector.load %arg3[%c0_3, %c0_4] : memref<1x256xf32, #tpu.memory_space<vmem>>, vector<1x256xf32>
    %4 = vector.broadcast %3 : vector<1x256xf32> to vector<8x256xf32>
    %5 = arith.addf %2, %4 : vector<8x256xf32>
    %cst_5 = arith.constant 5.000000e-01 : f32
    %6 = vector.broadcast %cst_5 : f32 to vector<8x256xf32>
    %7 = arith.mulf %6, %5 : vector<8x256xf32>
    %8 = math.tanh %7 : vector<8x256xf32>
    %cst_6 = arith.constant 1.000000e+00 : f32
    %9 = vector.broadcast %cst_6 : f32 to vector<8x256xf32>
    %10 = arith.addf %8, %9 : vector<8x256xf32>
    %cst_7 = arith.constant 5.000000e-01 : f32
    %11 = vector.broadcast %cst_7 : f32 to vector<8x256xf32>
    %12 = arith.mulf %11, %10 : vector<8x256xf32>
    %c0_8 = arith.constant 0 : index
    %c0_9 = arith.constant 0 : index
    %13 = vector.load %arg4[%c0_8, %c0_9] : memref<256x256xf32, #tpu.memory_space<vmem>>, vector<256x256xf32>
    %cst_10 = arith.constant dense<0.000000e+00> : vector<8x256xf32>
    %14 = tpu.matmul %12, %13, %cst_10 {dimension_numbers = #tpu.dot_dimension_numbers<[1], [0], [0], [1], [0, 0, 1, 1], [], []>} : vector<8x256xf32>, vector<256x256xf32>, vector<8x256xf32> -> vector<8x256xf32>
    %c0_11 = arith.constant 0 : index
    %c0_12 = arith.constant 0 : index
    %15 = vector.load %arg5[%c0_11, %c0_12] : memref<1x256xf32, #tpu.memory_space<vmem>>, vector<1x256xf32>
    %16 = vector.broadcast %15 : vector<1x256xf32> to vector<8x256xf32>
    %17 = arith.addf %14, %16 : vector<8x256xf32>
    %cst_13 = arith.constant 5.000000e-01 : f32
    %18 = vector.broadcast %cst_13 : f32 to vector<8x256xf32>
    %19 = arith.mulf %18, %17 : vector<8x256xf32>
    %20 = math.tanh %19 : vector<8x256xf32>
    %cst_14 = arith.constant 1.000000e+00 : f32
    %21 = vector.broadcast %cst_14 : f32 to vector<8x256xf32>
    %22 = arith.addf %20, %21 : vector<8x256xf32>
    %cst_15 = arith.constant 5.000000e-01 : f32
    %23 = vector.broadcast %cst_15 : f32 to vector<8x256xf32>
    %24 = arith.mulf %23, %22 : vector<8x256xf32>
    %c0_16 = arith.constant 0 : index
    %c0_17 = arith.constant 0 : index
    %25 = vector.load %arg6[%c0_16, %c0_17] : memref<256x128xf32, #tpu.memory_space<vmem>>, vector<256x128xf32>
    %cst_18 = arith.constant dense<0.000000e+00> : vector<8x128xf32>
    %26 = tpu.matmul %24, %25, %cst_18 {dimension_numbers = #tpu.dot_dimension_numbers<[1], [0], [0], [1], [0, 0, 1, 1], [], []>} : vector<8x256xf32>, vector<256x128xf32>, vector<8x128xf32> -> vector<8x128xf32>
    %c0_19 = arith.constant 0 : index
    %c0_20 = arith.constant 0 : index
    %27 = vector.load %arg7[%c0_19, %c0_20] : memref<1x128xf32, #tpu.memory_space<vmem>>, vector<1x128xf32>
    %28 = vector.broadcast %27 : vector<1x128xf32> to vector<8x128xf32>
    %29 = arith.addf %26, %28 : vector<8x128xf32>
    %cst_21 = arith.constant 5.000000e-01 : f32
    %30 = vector.broadcast %cst_21 : f32 to vector<8x128xf32>
    %31 = arith.mulf %30, %29 : vector<8x128xf32>
    %32 = math.tanh %31 : vector<8x128xf32>
    %cst_22 = arith.constant 1.000000e+00 : f32
    %33 = vector.broadcast %cst_22 : f32 to vector<8x128xf32>
    %34 = arith.addf %32, %33 : vector<8x128xf32>
    %cst_23 = arith.constant 5.000000e-01 : f32
    %35 = vector.broadcast %cst_23 : f32 to vector<8x128xf32>
    %36 = arith.mulf %35, %34 : vector<8x128xf32>
    %c0_24 = arith.constant 0 : index
    %c0_25 = arith.constant 0 : index
    %37 = vector.load %arg8[%c0_24, %c0_25] : memref<8x128xf32, #tpu.memory_space<vmem>>, vector<8x128xf32>
    tpu.vector_store %arg8[%c0_24, %c0_25], %36 {strides = array<i32>} : memref<8x128xf32, #tpu.memory_space<vmem>>, vector<8x128xf32>,
    return
  }
  func.func @transform_0(%arg0: i32) -> (i32, i32) {
    %c0_i32 = arith.constant 0 : i32
    %c0_i32_0 = arith.constant 0 : i32
    return %arg0, %c0_i32 : i32, i32
  }
  func.func @transform_1(%arg0: i32) -> (i32, i32) {
    %c0_i32 = arith.constant 0 : i32
    %c0_i32_0 = arith.constant 0 : i32
    %c0_i32_1 = arith.constant 0 : i32
    return %c0_i32, %c0_i32_0 : i32, i32
  }
  func.func @transform_2(%arg0: i32) -> (i32, i32) {
    %c0_i32 = arith.constant 0 : i32
    %c0_i32_0 = arith.constant 0 : i32
    %c0_i32_1 = arith.constant 0 : i32
    return %c0_i32, %c0_i32_0 : i32, i32
  }
  func.func @transform_3(%arg0: i32) -> (i32, i32) {
    %c0_i32 = arith.constant 0 : i32
    %c0_i32_0 = arith.constant 0 : i32
    %c0_i32_1 = arith.constant 0 : i32
    return %c0_i32, %c0_i32_0 : i32, i32
  }
  func.func @transform_4(%arg0: i32) -> (i32, i32) {
    %c0_i32 = arith.constant 0 : i32
    %c0_i32_0 = arith.constant 0 : i32
    %c0_i32_1 = arith.constant 0 : i32
    return %c0_i32, %c0_i32_0 : i32, i32
  }
  func.func @transform_5(%arg0: i32) -> (i32, i32) {
    %c0_i32 = arith.constant 0 : i32
    %c0_i32_0 = arith.constant 0 : i32
    %c0_i32_1 = arith.constant 0 : i32
    return %c0_i32, %c0_i32_0 : i32, i32
  }
  func.func @transform_6(%arg0: i32) -> (i32, i32) {
    %c0_i32 = arith.constant 0 : i32
    %c0_i32_0 = arith.constant 0 : i32
    %c0_i32_1 = arith.constant 0 : i32
    return %c0_i32, %c0_i32_0 : i32, i32
  }
  func.func @transform_7(%arg0: i32) -> (i32, i32) {
    %c0_i32 = arith.constant 0 : i32
    %c0_i32_0 = arith.constant 0 : i32
    return %arg0, %c0_i32 : i32, i32
  }
}

</mosaic_0001>

<bundles_post_ra>
// kernel: tpu_custom_call.1
= control target key start
LH: loop header
LB: loop body
LE: loop exit
PB: predicated region body
PF: predicated region fallthrough
CT: control target
= control target key end

     0   :  { %12 = vsyncpa [#allocation3], 0  ;;  %s878_s0 = inlined_call_operand.hbm [shape: f32[8,32], index: 0, kind: input, shape index: {}]   ;;  %s879_s1 = inlined_call_operand.hbm [shape: f32[32,256], index: 1, kind: input, shape index: {}]   ;;  %s880_s2 = inlined_call_operand.vmem [shape: f32[1,256], index: 2, kind: input, shape index: {}]   ;;  %s881_s3 = inlined_call_operand.hbm [shape: f32[256,256], index: 3, kind: input, shape index: {}]   ;;  %s882_s4 = inlined_call_operand.vmem [shape: f32[1,256], index: 4, kind: input, shape index: {}]   ;;  %s883_s5 = inlined_call_operand.hbm [shape: f32[256,128], index: 5, kind: input, shape index: {}]   ;;  %s884_s6 = inlined_call_operand.vmem [shape: f32[1,128], index: 6, kind: input, shape index: {}]   ;;  %s885_s7 = inlined_call_operand.hbm [shape: f32[8,128], index: 7, kind: output, shape index: {}]  }
   0x1   :  { %13 = vsyncpa [#allocation6], 0 }
   0x2   :  { %14 = vsyncpa [#allocation9], 0 }
   0x3   :  { %15 = vsyncpa [#allocation4], 0  ;;  %s749_s24 = smov [#allocation5]   ;;  %s631_s28 = scalar_lea.hbm %s879_s1, 1024 }
   0x4   :  { %s31_s25 = sshll.u32 %s749_s24, 4  ;;  %p632_p0 = scmp.ne.s32.totalorder %s879_s1, %s631_s28  ;;  %s32_s25 = int_to_ptr.vmem [resolvable:$true] %s31_s25 }
   0x5   :  { %p635_p1 = scmp.lt.u32.totalorder %s631_s28, %s879_s1 }
   0x7   :  { %p637_p2 = pnand %p635_p1, %p632_p0 }
   0x9   :  { %640 = shalt.err (!%p637_p2)
}
   0xa   :  { %s641_s10 = scalar_lea.vmem %s32_s25, 1024  ;;  %p646_p4 = scmp.lt.s32.totalorder %s32_s25, %s32_s25 }
   0xb   :  { %p642_p3 = scmp.ne.s32.totalorder %s32_s25, %s641_s10  ;;  %p647_p5 = scmp.lt.s32.totalorder %s641_s10, %s641_s10 }
   0xd   :  { %p648_p6 = por %p647_p5, %p646_p4 }
   0xf   :  { %p649_p7 = pnand %p648_p6, %p642_p3 }
  0x11   :  { %652 = shalt.err (!%p649_p7)
}
  0x12   :  { %s750_s11 = smov 256   ;;  %s751_s12 = smov 16  }
  0x13   :  { %37 = dma.hbm_to_vmem [thread:$0]  %s879_s1, 1024, %s32_s25, [#allocation6], %s750_s11, %s750_s11, %s751_s12  }
  0x14   :  { %s752_s15 = smov [#allocation2]   ;;  %s753_s17 = smov [#allocation7]  }
  0x15   :  { %s22_s16 = sshll.u32 %s752_s15, 4  ;;  %s45_s18 = sshll.u32 %s753_s17, 4  ;;  %s23_s16 = int_to_ptr.vmem [resolvable:$true] %s22_s16  ;;  %s46_s18 = int_to_ptr.vmem [resolvable:$true] %s45_s18 }
  0x16   :  { %s653_s21 = scalar_lea.hbm %s878_s0, 128 }
  0x17   :  { %p654_p8 = scmp.ne.s32.totalorder %s878_s0, %s653_s21  ;;  %p657_p9 = scmp.lt.u32.totalorder %s653_s21, %s878_s0 }
  0x19   :  { %p659_p10 = pnand %p657_p9, %p654_p8 }
  0x1b   :  { %662 = shalt.err (!%p659_p10)
}
  0x1c   :  { %s663_s1 = scalar_lea.vmem %s23_s16, 128  ;;  %p668_p12 = scmp.lt.s32.totalorder %s23_s16, %s23_s16 }
  0x1d   :  { %p664_p11 = scmp.ne.s32.totalorder %s23_s16, %s663_s1  ;;  %p669_p13 = scmp.lt.s32.totalorder %s663_s1, %s663_s1 }
  0x1f   :  { %p670_p0 = por %p669_p13, %p668_p12 }
  0x21   :  { %p671_p1 = pnand %p670_p0, %p664_p11 }
  0x23   :  { %674 = shalt.err (!%p671_p1)
}
  0x24   :  { %25 = dma.hbm_to_vmem [thread:$0]  %s878_s0, 128, %s23_s16, [#allocation3]  }
  0x25   :  { %s675_s30 = scalar_lea.hbm %s881_s3, 8192 }
  0x26   :  { %p676_p2 = scmp.ne.s32.totalorder %s881_s3, %s675_s30  ;;  %p679_p3 = scmp.lt.u32.totalorder %s675_s30, %s881_s3 }
  0x28   :  { %p681_p4 = pnand %p679_p3, %p676_p2 }
  0x2a   :  { %684 = shalt.err (!%p681_p4)
}
  0x2b   :  { %s685_s14 = scalar_lea.vmem %s46_s18, 8192  ;;  %p690_p6 = scmp.lt.s32.totalorder %s46_s18, %s46_s18 }
  0x2c   :  { %p686_p5 = scmp.ne.s32.totalorder %s46_s18, %s685_s14  ;;  %p691_p7 = scmp.lt.s32.totalorder %s685_s14, %s685_s14 }
  0x2e   :  { %p692_p8 = por %p691_p7, %p690_p6 }
  0x30   :  { %p693_p9 = pnand %p692_p8, %p686_p5 }
  0x32   :  { %696 = shalt.err (!%p693_p9)
}
  0x33   :  { %51 = dma.hbm_to_vmem [thread:$0]  %s881_s3, 8192, %s46_s18, [#allocation6], %s750_s11, %s750_s11, %s751_s12  }
  0x34   :  { %s754_s16 = smov [#allocation8]   ;;  %s697_s21 = scalar_lea.hbm %s883_s5, 4096 }
  0x35   :  { %s59_s17 = sshll.u32 %s754_s16, 4  ;;  %p698_p10 = scmp.ne.s32.totalorder %s883_s5, %s697_s21  ;;  %s60_s17 = int_to_ptr.vmem [resolvable:$true] %s59_s17 }
  0x36   :  { %p701_p11 = scmp.lt.u32.totalorder %s697_s21, %s883_s5 }
  0x38   :  { %p703_p12 = pnand %p701_p11, %p698_p10 }
  0x3a   :  { %706 = shalt.err (!%p703_p12)
}
  0x3b   :  { %s707_s1 = scalar_lea.vmem %s60_s17, 4096  ;;  %p712_p0 = scmp.lt.s32.totalorder %s60_s17, %s60_s17 }
  0x3c   :  { %p708_p13 = scmp.ne.s32.totalorder %s60_s17, %s707_s1  ;;  %p713_p1 = scmp.lt.s32.totalorder %s707_s1, %s707_s1 }
  0x3e   :  { %p714_p2 = por %p713_p1, %p712_p0 }
  0x40   :  { %p715_p3 = pnand %p714_p2, %p708_p13 }
  0x42   :  { %718 = shalt.err (!%p715_p3)
}
  0x43   :  { %s755_s3 = smov 128   ;;  %s756_s11 = smov 8  }
  0x44   :  { %65 = dma.hbm_to_vmem [thread:$0]  %s883_s5, 4096, %s60_s17, [#allocation9], %s755_s3, %s755_s3, %s756_s11  }
  0x45   :  { %741 = dma.done.wait [#allocation3], 128  }
  0x46   :  { %742 = vsyncadd [#allocation3], 4294967168 }
  0x47   :  { %743 = dma.done.wait [#allocation6], 9216  }
  0x48   :  { %744 = vsyncadd [#allocation6], 4294958080 }
  0x49   :  { %745 = dma.done.wait [#allocation9], 4096  }
  0x4a   :  { %746 = vsyncadd [#allocation9], 4294963200  ;;  %v757_v0 = vmov 0.0   ;;  %v82_v1 = vld [vmem:[#allocation5 + $0x8] sm:$0xff]  ;;  %v84_v2 = vld [vmem:[#allocation5 + $0x18] sm:$0xff]  ;;  %vm101_vm0 = vcmask 261120  }
  0x4b   :  { %169 = vmatprep.mubr.f32.mxu0 %v757_v0  ;;  %v81_v3 = vld [vmem:[#allocation5] sm:$0xff]  ;;  %v507_v4 = vpack.c.bf16 %v84_v2, %v82_v1  ;;  %v83_v5 = vld [vmem:[#allocation5 + $0x10] sm:$0xff]  ;;  %v86_v6 = vld [vmem:[#allocation5 + $0x28] sm:$0xff]  ;;  %s758_s29 = smov [#allocation10]  }
  0x4c   :  { %v88_v7 = vld [vmem:[#allocation5 + $0x38] sm:$0xff]  ;;  %v509_v8 = vpack.c.bf16 %v83_v5, %v81_v3  ;;  %v85_v10 = vld [vmem:[#allocation5 + $0x20] sm:$0xff]  ;;  %v87_v11 = vld [vmem:[#allocation5 + $0x30] sm:$0xff]  ;;  %s459_s30 = sshll.u32 %s758_s29, 4  ;;  %s460_s30 = int_to_ptr.vmem [resolvable:$true] %s459_s30 }
  0x4d   :  { %v511_v9 = vpack.c.bf16 %v88_v7, %v86_v6  ;;  %508 = vmatprep.subr.bf16.mxu0 %v507_v4  ;;  %v185_v12 = vld [vmem:[#allocation7 + $0x8] sm:$0xff]  ;;  %v187_v13 = vld [vmem:[#allocation7 + $0x18] sm:$0xff]  ;;  %v184_v14 = vld [vmem:[#allocation7] sm:$0xff]  ;;  %v513_v15 = vpack.c.bf16 %v87_v11, %v85_v10  ;;  %s719_s8 = scalar_lea.vmem %s460_s30, 128  ;;  %p724_p5 = scmp.lt.s32.totalorder %s460_s30, %s460_s30 }
  0x4e   :  { %510 = vmatpush1.bf16.msra.mxu0 %v509_v8  ;;  %v515_v16 = vpack.c.bf16 %v187_v13, %v185_v12  ;;  %v186_v17 = vld [vmem:[#allocation7 + $0x10] sm:$0xff]  ;;  %v189_v18 = vld [vmem:[#allocation7 + $0x28] sm:$0xff]  ;;  %v191_v19 = vld [vmem:[#allocation7 + $0x38] sm:$0xff]  ;;  %p720_p4 = scmp.ne.s32.totalorder %s460_s30, %s719_s8  ;;  %p725_p6 = scmp.lt.s32.totalorder %s719_s8, %s719_s8 }
  0x4f   :  { %512 = vmatprep.subr.bf16.mxu0 %v511_v9  ;;  %v517_v20 = vpack.c.bf16 %v186_v17, %v184_v14  ;;  %v519_v21 = vpack.c.bf16 %v191_v19, %v189_v18  ;;  %v188_v22 = vld [vmem:[#allocation7 + $0x20] sm:$0xff]  ;;  %v190_v23 = vld [vmem:[#allocation7 + $0x30] sm:$0xff]  ;;  %v193_v24 = vld [vmem:[#allocation7 + $0x48] sm:$0xff] }
  0x50   :  { %516 = vmatprep.subr.bf16.mxu1 %v515_v16  ;;  %v195_v25 = vld [vmem:[#allocation7 + $0x58] sm:$0xff]  ;;  %v521_v26 = vpack.c.bf16 %v190_v23, %v188_v22  ;;  %v192_v29 = vld [vmem:[#allocation7 + $0x40] sm:$0xff]  ;;  %v194_v30 = vld [vmem:[#allocation7 + $0x50] sm:$0xff]  ;;  %p726_p7 = por %p725_p6, %p724_p5 }
  0x51   :  { %518 = vmatpush1.bf16.msra.mxu1 %v517_v20  ;;  %v80_v27 = vld [vmem:[#allocation2] sm:$0xff]  ;;  %v523_v28 = vpack.c.bf16 %v195_v25, %v193_v24  ;;  %v197_v31 = vld [vmem:[#allocation7 + $0x68] sm:$0xff]  ;;  %v525_v33 = vpack.c.bf16 %v194_v30, %v192_v29  ;;  %v196_v35 = vld [vmem:[#allocation7 + $0x60] sm:$0xff] }
  0x52   :  { %514 = vmatpush1.bf16.msra.mxu0 %v513_v15  ;;  %520 = vmatprep.subr.bf16.mxu1 %v519_v21  ;;  %v199_v32 = vld [vmem:[#allocation7 + $0x78] sm:$0xff]  ;;  %v198_v36 = vld [vmem:[#allocation7 + $0x70] sm:$0xff]  ;;  %v201_v37 = vld [vmem:[#allocation7 + $0x88] sm:$0xff]  ;;  %p727_p8 = pnand %p726_p7, %p720_p4 }
  0x53   :  { %v527_v34 = vpack.c.bf16 %v199_v32, %v197_v31  ;;  %v203_v38 = vld [vmem:[#allocation7 + $0x98] sm:$0xff]  ;;  %v529_v39 = vpack.c.bf16 %v198_v36, %v196_v35  ;;  %v200_v41 = vld [vmem:[#allocation7 + $0x80] sm:$0xff]  ;;  %v202_v42 = vld [vmem:[#allocation7 + $0x90] sm:$0xff] }
  0x54   :  { %v531_v40 = vpack.c.bf16 %v203_v38, %v201_v37  ;;  %v205_v43 = vld [vmem:[#allocation7 + $0xa8] sm:$0xff]  ;;  %v207_v44 = vld [vmem:[#allocation7 + $0xb8] sm:$0xff]  ;;  %v533_v45 = vpack.c.bf16 %v202_v42, %v200_v41  ;;  %v204_v47 = vld [vmem:[#allocation7 + $0xa0] sm:$0xff] }
  0x55   :  { %470 = vmatmul.mubr.msk.f32.vlgmr.msra.gmra.mrb[0].mxu0 %vm101_vm0, %v80_v27  ;;  %522 = vmatpush1.bf16.msra.mxu1 %v521_v26  ;;  %v535_v46 = vpack.c.bf16 %v207_v44, %v205_v43  ;;  %v206_v48 = vld [vmem:[#allocation7 + $0xb0] sm:$0xff]  ;;  %v209_v49 = vld [vmem:[#allocation7 + $0xc8] sm:$0xff]  ;;  %v211_v50 = vld [vmem:[#allocation7 + $0xd8] sm:$0xff] }
  0x56   :  { %524 = vmatprep.subr.bf16.mxu1 %v523_v28  ;;  %v537_v51 = vpack.c.bf16 %v206_v48, %v204_v47  ;;  %v539_v52 = vpack.c.bf16 %v211_v50, %v209_v49  ;;  %v208_v53 = vld [vmem:[#allocation7 + $0xc0] sm:$0xff]  ;;  %v210_v54 = vld [vmem:[#allocation7 + $0xd0] sm:$0xff]  ;;  %v213_v55 = vld [vmem:[#allocation7 + $0xe8] sm:$0xff] }
  0x57   :  { %v215_v56 = vld [vmem:[#allocation7 + $0xf8] sm:$0xff]  ;;  %v541_v57 = vpack.c.bf16 %v210_v54, %v208_v53  ;;  %v212_v59 = vld [vmem:[#allocation7 + $0xe0] sm:$0xff]  ;;  %v214_v60 = vld [vmem:[#allocation7 + $0xf0] sm:$0xff] }
  0x58   :  { %v543_v58 = vpack.c.bf16 %v215_v56, %v213_v55  ;;  %v217_v61 = vld [vmem:[#allocation7 + $0x108] sm:$0xff]  ;;  %v219_v62 = vld [vmem:[#allocation7 + $0x118] sm:$0xff]  ;;  %v545_v63 = vpack.c.bf16 %v214_v60, %v212_v59  ;;  %v216_v1 = vld [vmem:[#allocation7 + $0x100] sm:$0xff] }
  0x59   :  { %526 = vmatpush1.bf16.msra.mxu1 %v525_v33  ;;  %v547_v0 = vpack.c.bf16 %v219_v62, %v217_v61  ;;  %v218_v2 = vld [vmem:[#allocation7 + $0x110] sm:$0xff]  ;;  %v221_v3 = vld [vmem:[#allocation7 + $0x128] sm:$0xff]  ;;  %v223_v4 = vld [vmem:[#allocation7 + $0x138] sm:$0xff] }
  0x5a   :  { %528 = vmatprep.subr.bf16.mxu1 %v527_v34  ;;  %v549_v5 = vpack.c.bf16 %v218_v2, %v216_v1  ;;  %v551_v6 = vpack.c.bf16 %v223_v4, %v221_v3  ;;  %v220_v7 = vld [vmem:[#allocation7 + $0x120] sm:$0xff]  ;;  %v222_v8 = vld [vmem:[#allocation7 + $0x130] sm:$0xff]  ;;  %v225_v9 = vld [vmem:[#allocation7 + $0x148] sm:$0xff] }
  0x5b   :  { %v227_v10 = vld [vmem:[#allocation7 + $0x158] sm:$0xff]  ;;  %v553_v11 = vpack.c.bf16 %v222_v8, %v220_v7  ;;  %v224_v13 = vld [vmem:[#allocation7 + $0x140] sm:$0xff]  ;;  %v226_v14 = vld [vmem:[#allocation7 + $0x150] sm:$0xff] }
  0x5c   :  { %v555_v12 = vpack.c.bf16 %v227_v10, %v225_v9  ;;  %v557_v15 = vpack.c.bf16 %v226_v14, %v224_v13  ;;  %v229_v16 = vld [vmem:[#allocation7 + $0x168] sm:$0xff]  ;;  %v231_v17 = vld [vmem:[#allocation7 + $0x178] sm:$0xff]  ;;  %v228_v19 = vld [vmem:[#allocation7 + $0x160] sm:$0xff] }
  0x5d   :  { %530 = vmatpush1.bf16.msra.mxu1 %v529_v39  ;;  %v559_v18 = vpack.c.bf16 %v231_v17, %v229_v16  ;;  %v230_v20 = vld [vmem:[#allocation7 + $0x170] sm:$0xff]  ;;  %v233_v22 = vld [vmem:[#allocation7 + $0x188] sm:$0xff]  ;;  %v235_v23 = vld [vmem:[#allocation7 + $0x198] sm:$0xff] }
  0x5e   :  { %532 = vmatprep.subr.bf16.mxu1 %v531_v40  ;;  %v561_v21 = vpack.c.bf16 %v230_v20, %v228_v19  ;;  %v563_v24 = vpack.c.bf16 %v235_v23, %v233_v22  ;;  %v232_v25 = vld [vmem:[#allocation7 + $0x180] sm:$0xff]  ;;  %v234_v26 = vld [vmem:[#allocation7 + $0x190] sm:$0xff]  ;;  %v237_v28 = vld [vmem:[#allocation7 + $0x1a8] sm:$0xff] }
  0x5f   :  { %v565_v27 = vpack.c.bf16 %v234_v26, %v232_v25  ;;  %v239_v29 = vld [vmem:[#allocation7 + $0x1b8] sm:$0xff]  ;;  %v236_v31 = vld [vmem:[#allocation7 + $0x1a0] sm:$0xff]  ;;  %v238_v32 = vld [vmem:[#allocation7 + $0x1b0] sm:$0xff] }
  0x60   :  { %v567_v30 = vpack.c.bf16 %v239_v29, %v237_v28  ;;  %v569_v33 = vpack.c.bf16 %v238_v32, %v236_v31  ;;  %v241_v34 = vld [vmem:[#allocation7 + $0x1c8] sm:$0xff]  ;;  %v243_v35 = vld [vmem:[#allocation7 + $0x1d8] sm:$0xff]  ;;  %v240_v37 = vld [vmem:[#allocation7 + $0x1c0] sm:$0xff] }
  0x61   :  { %534 = vmatpush1.bf16.msra.mxu1 %v533_v45  ;;  %v571_v36 = vpack.c.bf16 %v243_v35, %v241_v34  ;;  %v242_v38 = vld [vmem:[#allocation7 + $0x1d0] sm:$0xff]  ;;  %v245_v40 = vld [vmem:[#allocation7 + $0x1e8] sm:$0xff]  ;;  %v247_v41 = vld [vmem:[#allocation7 + $0x1f8] sm:$0xff] }
  0x62   :  { %536 = vmatprep.subr.bf16.mxu1 %v535_v46  ;;  %v573_v39 = vpack.c.bf16 %v242_v38, %v240_v37  ;;  %v575_v42 = vpack.c.bf16 %v247_v41, %v245_v40  ;;  %v244_v43 = vld [vmem:[#allocation7 + $0x1e0] sm:$0xff]  ;;  %v246_v44 = vld [vmem:[#allocation7 + $0x1f0] sm:$0xff]  ;;  %v356_v47 = vld [vmem:[#allocation8 + $0x88] sm:$0xff] }
  0x63   :  { %v577_v45 = vpack.c.bf16 %v246_v44, %v244_v43  ;;  %v355_v46 = vld [vmem:[#allocation8 + $0x80] sm:$0xff]  ;;  %v340_v50 = vld [vmem:[#allocation8 + $0x8] sm:$0xff]  ;;  %v341_v55 = vld [vmem:[#allocation8 + $0x10] sm:$0xff] }
  0x64   :  { %v339_v48 = vld [vmem:[#allocation8] sm:$0xff]  ;;  %v579_v49 = vpack.c.bf16 %v356_v47, %v355_v46  ;;  %v342_v56 = vld [vmem:[#allocation8 + $0x18] sm:$0xff]  ;;  %v344_v62 = vld [vmem:[#allocation8 + $0x28] sm:$0xff] }
  0x65   :  { %538 = vmatpush1.bf16.msra.mxu1 %v537_v51  ;;  %v357_v51 = vld [vmem:[#allocation8 + $0x90] sm:$0xff]  ;;  %v581_v53 = vpack.c.bf16 %v340_v50, %v339_v48  ;;  %v585_v59 = vpack.c.bf16 %v342_v56, %v341_v55  ;;  %v343_v61 = vld [vmem:[#allocation8 + $0x20] sm:$0xff]  ;;  %v89_v3 = vld [vmem:[%s880_s2] sm:$0x3] }
  0x66   :  { %540 = vmatprep.subr.bf16.mxu1 %v539_v52  ;;  %v358_v52 = vld [vmem:[#allocation8 + $0x98] sm:$0xff]  ;;  %580 = vmatprep.subr.bf16.mxu0 %v579_v49  ;;  %v361_v19 = vld [vmem:[#allocation8 + $0xb0] sm:$0xff]  ;;  %v363_v25 = vld [vmem:[#allocation8 + $0xc0] sm:$0xff] }
  0x67   :  { %v583_v54 = vpack.c.bf16 %v358_v52, %v357_v51  ;;  %582 = vmatpush3.bf16.msra.mxu0 %v581_v53  ;;  %v362_v20 = vld [vmem:[#allocation8 + $0xb8] sm:$0xff]  ;;  %v345_v22 = vld [vmem:[#allocation8 + $0x30] sm:$0xff]  ;;  %v364_v26 = vld [vmem:[#allocation8 + $0xc8] sm:$0xff] }
  0x68   :  { %v346_v23 = vld [vmem:[#allocation8 + $0x38] sm:$0xff]  ;;  %v347_v28 = vld [vmem:[#allocation8 + $0x40] sm:$0xff]  ;;  %v348_v29 = vld [vmem:[#allocation8 + $0x48] sm:$0xff] }
  0x69   :  { %542 = vmatpush1.bf16.msra.mxu1 %v541_v57  ;;  %v359_v57 = vld [vmem:[#allocation8 + $0xa0] sm:$0xff]  ;;  %584 = vmatprep.subr.bf16.mxu0 %v583_v54  ;;  %v365_v31 = vld [vmem:[#allocation8 + $0xd0] sm:$0xff]  ;;  %v366_v32 = vld [vmem:[#allocation8 + $0xd8] sm:$0xff] }
  0x6a   :  { %544 = vmatprep.subr.bf16.mxu1 %v543_v58  ;;  %v360_v58 = vld [vmem:[#allocation8 + $0xa8] sm:$0xff]  ;;  %v349_v34 = vld [vmem:[#allocation8 + $0x50] sm:$0xff]  ;;  %v350_v35 = vld [vmem:[#allocation8 + $0x58] sm:$0xff] }
  0x6b   :  { %v587_v60 = vpack.c.bf16 %v360_v58, %v359_v57  ;;  %586 = vmatpush3.bf16.msra.mxu0 %v585_v59  ;;  %v367_v37 = vld [vmem:[#allocation8 + $0xe0] sm:$0xff]  ;;  %v368_v38 = vld [vmem:[#allocation8 + $0xe8] sm:$0xff]  ;;  %v369_v43 = vld [vmem:[#allocation8 + $0xf0] sm:$0xff] }
  0x6c   :  { %v351_v40 = vld [vmem:[#allocation8 + $0x60] sm:$0xff]  ;;  %v352_v41 = vld [vmem:[#allocation8 + $0x68] sm:$0xff]  ;;  %v370_v44 = vld [vmem:[#allocation8 + $0xf8] sm:$0xff] }
  0x6d   :  { %546 = vmatpush1.bf16.msra.mxu1 %v545_v63  ;;  %v589_v63 = vpack.c.bf16 %v344_v62, %v343_v61  ;;  %588 = vmatprep.subr.bf16.mxu0 %v587_v60  ;;  %v353_v46 = vld [vmem:[#allocation8 + $0x70] sm:$0xff]  ;;  %v354_v47 = vld [vmem:[#allocation8 + $0x78] sm:$0xff] }
  0x6e   :  { %548 = vmatprep.subr.bf16.mxu1 %v547_v0  ;;  %v91_v0 = vlaneseq  ;;  %v609_v48 = vpack.c.bf16 %v354_v47, %v353_v46  ;;  %v248_v49 = vld [vmem:[%s882_s4] sm:$0x3] }
  0x6f   :  { %590 = vmatpush3.bf16.msra.mxu0 %v589_v63 }
  0x70   :  { %v853_v1 = vshrl.u32 %v91_v0, 7 }
  0x71   :  { %550 = vmatpush1.bf16.msra.mxu1 %v549_v5 }
  0x72   :  { %552 = vmatprep.subr.bf16.mxu1 %v551_v6  ;;  %v93_v2 = vsub.s32 0, %v853_v1  ;;  %v97_v4 = vsub.s32 1, %v853_v1  ;;  %v471_v1 = vld [vmem:[%s884_s6] ss:$0 sm:$0xff] }
  0x74   :  { %v94_v5 = vrot.slane %v89_v3, %v93_v2  ;;  %v98_v6 = vrot.slane %v89_v3, %v97_v4  ;;  %v253_v50 = vrot.slane %v248_v49, %v93_v2  ;;  %v257_v51 = vrot.slane %v248_v49, %v97_v4 }
  0x75   :  { %554 = vmatpush1.bf16.msra.mxu1 %v553_v11 }
  0x76   :  { %556 = vmatprep.subr.bf16.mxu1 %v555_v12 }
  0x79   :  { %558 = vmatpush1.bf16.msra.mxu1 %v557_v15 }
  0x7a   :  { %560 = vmatprep.subr.bf16.mxu1 %v559_v18 }
  0x7d   :  { %562 = vmatpush1.bf16.msra.mxu1 %v561_v21  ;;  %v591_v21 = vpack.c.bf16 %v362_v20, %v361_v19 }
  0x7e   :  { %564 = vmatprep.subr.bf16.mxu1 %v563_v24  ;;  %v593_v24 = vpack.c.bf16 %v346_v23, %v345_v22 }
  0x7f   :  { %592 = vmatprep.subr.bf16.mxu0 %v591_v21 }
  0x80   :  { %594 = vmatpush3.bf16.msra.mxu0 %v593_v24 }
  0x81   :  { %566 = vmatpush1.bf16.msra.mxu1 %v565_v27  ;;  %v595_v27 = vpack.c.bf16 %v364_v26, %v363_v25 }
  0x82   :  { %568 = vmatprep.subr.bf16.mxu1 %v567_v30  ;;  %v597_v30 = vpack.c.bf16 %v348_v29, %v347_v28 }
  0x83   :  { %596 = vmatprep.subr.bf16.mxu0 %v595_v27 }
  0x84   :  { %598 = vmatpush3.bf16.msra.mxu0 %v597_v30 }
  0x85   :  { %570 = vmatpush1.bf16.msra.mxu1 %v569_v33  ;;  %v599_v33 = vpack.c.bf16 %v366_v32, %v365_v31 }
  0x86   :  { %572 = vmatprep.subr.bf16.mxu1 %v571_v36  ;;  %v601_v36 = vpack.c.bf16 %v350_v35, %v349_v34 }
  0x87   :  { %600 = vmatprep.subr.bf16.mxu0 %v599_v33 }
  0x88   :  { %602 = vmatpush3.bf16.msra.mxu0 %v601_v36 }
  0x89   :  { %574 = vmatpush1.bf16.msra.mxu1 %v573_v39  ;;  %v603_v39 = vpack.c.bf16 %v368_v38, %v367_v37 }
  0x8a   :  { %576 = vmatprep.subr.bf16.mxu1 %v575_v42  ;;  %v605_v42 = vpack.c.bf16 %v352_v41, %v351_v40 }
  0x8b   :  { %604 = vmatprep.subr.bf16.mxu0 %v603_v39 }
  0x8c   :  { %606 = vmatpush3.bf16.msra.mxu0 %v605_v42 }
  0x8d   :  { %578 = vmatpush1.bf16.msra.mxu1 %v577_v45  ;;  %v607_v45 = vpack.c.bf16 %v370_v44, %v369_v43 }
  0x8f   :  { %608 = vmatprep.subr.bf16.mxu0 %v607_v45 }
  0x90   :  { %610 = vmatpush3.bf16.msra.mxu0 %v609_v48 }
 0x128   :  { %v171_v7 = vpop.f32.mrb[0].mxu0 }
 0x129   :  { %v172_v8 = vadd.f32 %v171_v7, %v94_v5  ;;  %v173_v9 = vpop.f32.mrb[1].mxu0 }
 0x12a   :  { %v174_v10 = vadd.f32 %v173_v9, %v98_v6 }
 0x12b   :  { %v176_v11 = vmul.f32 0.5, %v172_v8 }
 0x12c   :  { %v177_v12 = vmul.f32 0.5, %v174_v10 }
 0x12d   :  { %621 = vtanh.f32 %v176_v11 }
 0x12e   :  { %623 = vtanh.f32 %v177_v12 }
 0x137   :  { %v622_v13 = vpop.eup %621 }
 0x138   :  { %v624_v14 = vpop.eup %623  ;;  %v180_v15 = vadd.f32 1.0, %v622_v13 }
 0x139   :  { %v181_v16 = vadd.f32 1.0, %v624_v14 }
 0x13a   :  { %v182_v18 = vmul.f32 0.5, %v180_v15 }
 0x13b   :  { %v183_v17 = vmul.f32 0.5, %v181_v16 }
 0x13d   :  { %324 = vmatprep.mubr.f32.mxu1 %v183_v17 }
 0x13e   :  { %325 = vmatmul.mubr.f32.vlgmr.msra.gmra.mrb[0].mxu1 %v182_v18 }
 0x211   :  { %v326_v52 = vpop.f32.mrb[0].mxu1 }
 0x212   :  { %v327_v53 = vadd.f32 %v326_v52, %v253_v50  ;;  %v328_v54 = vpop.f32.mrb[1].mxu1 }
 0x213   :  { %v329_v55 = vadd.f32 %v328_v54, %v257_v51 }
 0x214   :  { %v331_v56 = vmul.f32 0.5, %v327_v53 }
 0x215   :  { %v332_v57 = vmul.f32 0.5, %v329_v55 }
 0x216   :  { %625 = vtanh.f32 %v331_v56 }
 0x217   :  { %627 = vtanh.f32 %v332_v57 }
 0x220   :  { %v626_v58 = vpop.eup %625 }
 0x221   :  { %v628_v59 = vpop.eup %627  ;;  %v335_v60 = vadd.f32 1.0, %v626_v58 }
 0x222   :  { %v336_v61 = vadd.f32 1.0, %v628_v59 }
 0x223   :  { %v337_v63 = vmul.f32 0.5, %v335_v60 }
 0x224   :  { %v338_v62 = vmul.f32 0.5, %v336_v61 }
 0x226   :  { %442 = vmatprep.mubr.f32.mxu0 %v338_v62 }
 0x227   :  { %443 = vmatmul.mubr.f32.vlgmr.msra.gmra.mrb[2].mxu0 %v337_v63 }
 0x2fa   :  { %v504_v0 = vpop.f32.mrb[2].mxu0 }
 0x2fb   :  { %v505_v2 = vpop.f32.mrb[3].mxu0 }
 0x2fc   :  { %v506_v3 = vadd.f32 %v505_v2, %v504_v0 }
 0x2fe   :  { %v445_v4 = vadd.f32 %v506_v3, %v471_v1 }
 0x300   :  { %v448_v5 = vmul.f32 0.5, %v445_v4 }
 0x302   :  { %629 = vtanh.f32 %v448_v5 }
 0x30c   :  { %v630_v6 = vpop.eup %629 }
 0x30d   :  { %v450_v7 = vadd.f32 1.0, %v630_v6 }
 0x30f   :  { %v451_v8 = vmul.f32 0.5, %v450_v7 }
 0x311   :  { %452 = vst [vmem:[#allocation10] sm:$0xff] %v451_v8 }
 0x312   :  { %730 = shalt.err (!%p727_p8)
}
 0x313   :  { %s731_s10 = scalar_lea.hbm %s885_s7, 128 }
 0x314   :  { %p732_p9 = scmp.ne.s32.totalorder %s885_s7, %s731_s10  ;;  %p735_p10 = scmp.lt.u32.totalorder %s731_s10, %s885_s7 }
 0x316   :  { %p737_p11 = pnand %p735_p10, %p732_p9 }
 0x318   :  { %740 = shalt.err (!%p737_p11)
}
 0x319   :  { %462 = dma.vmem_to_hbm [thread:$0]  %s460_s30, 128, %s885_s7, [#allocation4]  }
 0x31a   :  { %747 = dma.done.wait [#allocation4], 128  }
 0x31b   :  { %748 = vsyncadd [#allocation4], 4294967168 }
 0x31c   :  { %466 = vsyncpa [#allocation3], 1 }
 0x31d   :  { %467 = vsyncpa [#allocation6], 1 }
 0x31e   :  { %468 = vsyncpa [#allocation9], 1 }
 0x31f   :  { %469 = vsyncpa [#allocation4], 1 }

</bundles_post_ra>
